<compile_context>
chip_gen: v7x
topology: tpu7x:2x2x1
jax: 0.10.0
libtpu: 0.0.40
codegen_flags: <defaults>
</compile_context>

<pallas_src>
import functools

import jax
import jax.numpy as jnp
import numpy as np
from jax.experimental import pallas as pl
from jax.experimental.pallas import tpu as pltpu


def _detection_loss_kernel(cls_logits_ref, pred_bbox_ref, tgt_cls_ref, tgt_bbox_ref,
                           out_ref, acc_cls_ref, acc_box_ref,
                           *, lambda_reg, batch, block_batch):
    step = pl.program_id(0)

    @pl.when(step == 0)
    def _init():
        acc_cls_ref[...] = jnp.zeros_like(acc_cls_ref)
        acc_box_ref[...] = jnp.zeros_like(acc_box_ref)

    # Cast in-kernel (VPU); DMA stays at the caller's dtype width.
    logits = cls_logits_ref[...].astype(jnp.float32)   # (TB, C)
    pred = pred_bbox_ref[...].astype(jnp.float32)      # (TB, 4)
    tgt_cls = tgt_cls_ref[...].astype(jnp.int32)       # (TB, M)
    tgt_box = tgt_bbox_ref[...].astype(jnp.float32)    # (TB, 4*M), natural [m,k] -> col 4*m+k

    TB, C = logits.shape
    M = tgt_cls.shape[1]

    row_ids = step * block_batch + jax.lax.broadcasted_iota(jnp.int32, (TB, 1), 0)
    row_valid = row_ids < batch                        # mask padded tail rows

    # --- first valid detection per image (mask, no gather) ---
    pos = jax.lax.broadcasted_iota(jnp.int32, (TB, M), 1)
    valid = tgt_cls != -1
    first_idx = jnp.min(jnp.where(valid, pos, M), axis=1, keepdims=True)  # (TB, 1); == M if none
    has_valid = first_idx < M
    sel_idx = jnp.where(has_valid, first_idx, 0)                          # clamp for no-valid rows

    # class target: picked label, or 0 when no valid detection
    onehot_box = pos == sel_idx                                           # exactly one column set
    picked_cls = jnp.sum(jnp.where(onehot_box, tgt_cls, 0), axis=1, keepdims=True)
    class_target = jnp.where(has_valid, picked_cls, 0)                    # (TB, 1) int32

    # bbox target (TB, 4): unrolled masked sum over the M contiguous 4-wide groups
    bbox_target = jnp.zeros((TB, 4), jnp.float32)
    for m in range(M):                                                    # static unroll, M is tiny
        mask_m = jnp.logical_and(sel_idx == m, has_valid)                 # (TB, 1)
        bbox_target = bbox_target + jnp.where(mask_m, tgt_box[:, 4 * m:4 * (m + 1)], 0.0)

    # --- CrossEntropy per row (f32 throughout) ---
    mrow = jnp.max(logits, axis=1, keepdims=True)                         # (TB, 1)
    lse = mrow + jnp.log(jnp.sum(jnp.exp(logits - mrow), axis=1, keepdims=True))
    cls_iota = jax.lax.broadcasted_iota(jnp.int32, (TB, C), 1)
    picked_logit = jnp.sum(jnp.where(cls_iota == class_target, logits, 0.0),
                           axis=1, keepdims=True)                         # (TB, 1)
    ce = jnp.where(row_valid, lse - picked_logit, 0.0)                    # (TB, 1)

    # --- SmoothL1 (beta=1) per row/coord ---
    diff = jnp.abs(pred - bbox_target)
    sl1 = jnp.where(diff < 1.0, 0.5 * diff * diff, diff - 0.5)
    sl1 = jnp.where(row_valid, sl1, 0.0)                                  # (TB, 4)

    # vreg-friendly accumulation: plain VPU adds, no per-step cross-sublane reduce
    acc_cls_ref[...] += ce
    acc_box_ref[...] += sl1

    @pl.when(step == pl.num_programs(0) - 1)
    def _finalize():
        cls_sum = jnp.sum(acc_cls_ref[...], axis=0, keepdims=True)                         # (1,1)
        box_sum = jnp.sum(jnp.sum(acc_box_ref[...], axis=1, keepdims=True),
                          axis=0, keepdims=True)                                           # (1,1)
        out_ref[...] = cls_sum * (1.0 / batch) + lambda_reg * (box_sum * (1.0 / (batch * 4)))


def inception_detection_loss(cls_logits, pred_bbox, tgt_cls, tgt_bbox,
                             lambda_reg=1.0, block_batch=1024):
    """Pallas TPU implementation of InceptionDetectionLoss.forward."""
    B, C = cls_logits.shape
    M = tgt_cls.shape[1]
    assert pred_bbox.shape == (B, 4)
    assert tgt_bbox.shape == (B, M, 4)

    # Free contiguous reshape; keeps the largest input in its natural HBM layout.
    tgt_bbox_flat = tgt_bbox.reshape(B, M * 4)

    # Batch tile: multiple of 128, shrunk for small B and to fit a conservative VMEM budget.
    tb = min(int(block_batch), ((B + 127) // 128) * 128)
    tb = max(128, (tb // 128) * 128)

    def _block_bytes(t):
        return (t * C * cls_logits.dtype.itemsize
                + t * 4 * pred_bbox.dtype.itemsize
                + t * M * tgt_cls.dtype.itemsize
                + t * 4 * M * tgt_bbox.dtype.itemsize)

    budget = 24 << 20   # double-buffered input blocks must fit well under v5e/v7x scoped VMEM
    while tb > 128 and 2 * _block_bytes(tb) > budget:
        tb -= 128
    nb = pl.cdiv(B, tb)

    scratch_bytes = tb * (1 + 4) * 4
    vmem_limit = 2 * _block_bytes(tb) + scratch_bytes + (4 << 20)
    vmem_limit = int(min(max(vmem_limit, 8 << 20), 48 << 20))

    in_bytes = sum(int(x.size) * x.dtype.itemsize
                   for x in (cls_logits, pred_bbox, tgt_cls, tgt_bbox))
    cost = pl.CostEstimate(flops=int(B * (5 * C + 10 * M + 32)),
                           transcendentals=int(B * (C + 1)),
                           bytes_accessed=int(in_bytes + 4))

    kernel = functools.partial(_detection_loss_kernel,
                               lambda_reg=float(lambda_reg),
                               batch=int(B),
                               block_batch=int(tb))

    out = pl.pallas_call(
        kernel,
        out_shape=jax.ShapeDtypeStruct((1, 1), jnp.float32),
        grid_spec=pltpu.PrefetchScalarGridSpec(
            num_scalar_prefetch=0,
            grid=(nb,),
            in_specs=[
                pl.BlockSpec((tb, C), lambda i: (i, 0)),        # logits       (B, C)
                pl.BlockSpec((tb, 4), lambda i: (i, 0)),        # pred bboxes  (B, 4)
                pl.BlockSpec((tb, M), lambda i: (i, 0)),        # target cls   (B, M)
                pl.BlockSpec((tb, 4 * M), lambda i: (i, 0)),    # target boxes (B, 4*M)
            ],
            out_specs=pl.BlockSpec((1, 1), lambda i: (0, 0)),
            scratch_shapes=[pltpu.VMEM((tb, 1), jnp.float32),   # per-row CE partials
                            pltpu.VMEM((tb, 4), jnp.float32)],  # per-row/coord SmoothL1 partials
        ),
        compiler_params=pltpu.CompilerParams(
            dimension_semantics=("arbitrary",),
            vmem_limit_bytes=vmem_limit),
        cost_estimate=cost,
    )(cls_logits, pred_bbox, tgt_cls, tgt_bbox_flat)
    return out[0, 0]


def _reference_loss(cls_logits, pred_bbox, tgt_cls, tgt_bbox, lambda_reg=1.0):
    """Pure-JAX reference mirroring the PyTorch forward."""
    B, M = tgt_cls.shape
    valid = tgt_cls != -1
    pos = jnp.arange(M)[None, :]
    first_idx = jnp.min(jnp.where(valid, pos, M), axis=1)
    has_valid = first_idx < M
    idx = jnp.where(has_valid, first_idx, 0)
    class_target = jnp.where(
        has_valid, jnp.take_along_axis(tgt_cls, idx[:, None], axis=1)[:, 0], 0)
    bbox_target = jnp.where(
        has_valid[:, None],
        jnp.take_along_axis(tgt_bbox, idx[:, None, None], axis=1)[:, 0, :], 0.0)
    logz = jax.scipy.special.logsumexp(cls_logits, axis=1)
    picked = jnp.take_along_axis(cls_logits, class_target[:, None], axis=1)[:, 0]
    class_loss = jnp.mean(logz - picked)
    diff = jnp.abs(pred_bbox - bbox_target)
    sl1 = jnp.where(diff < 1.0, 0.5 * diff * diff, diff - 0.5)
    return class_loss + lambda_reg * jnp.mean(sl1)


if __name__ == "__main__":
    key = jax.random.PRNGKey(0)

    # Case 1: small shapes, image 0 has no valid detections (class 0 / zero-box path).
    B, C, M = 4, 8, 6
    k1, k2, k3, k4, k5 = jax.random.split(key, 5)
    cls_logits = jax.random.normal(k1, (B, C), dtype=jnp.float32)      # outputs['classes']
    pred_bbox = jax.random.normal(k2, (B, 4), dtype=jnp.float32)       # outputs['bboxes']
    tgt_cls = jax.random.randint(k3, (B, M), -1, C).astype(jnp.int32)  # targets['classes']
    tgt_cls = tgt_cls.at[0].set(-1)
    tgt_bbox = jax.random.normal(k4, (B, M, 4), dtype=jnp.float32)     # targets['bboxes']

    loss = inception_detection_loss(cls_logits, pred_bbox, tgt_cls, tgt_bbox, lambda_reg=1.0)
    loss = jax.block_until_ready(loss)
    ref = _reference_loss(cls_logits, pred_bbox, tgt_cls, tgt_bbox, lambda_reg=1.0)
    assert np.allclose(np.asarray(loss), np.asarray(ref), rtol=1e-5, atol=1e-5), (loss, ref)

    # Case 2: exercises a multi-step batch grid with a padded tail block.
    B2, C2, M2 = 200, 16, 6
    kk = jax.random.split(k5, 4)
    cls2 = jax.random.normal(kk[0], (B2, C2), dtype=jnp.float32)
    pb2 = jax.random.normal(kk[1], (B2, 4), dtype=jnp.float32)
    tc2 = jax.random.randint(kk[2], (B2, M2), -1, C2).astype(jnp.int32)
    tbx2 = jax.random.normal(kk[3], (B2, M2, 4), dtype=jnp.float32)

    loss2 = inception_detection_loss(cls2, pb2, tc2, tbx2, lambda_reg=0.5, block_batch=128)
    loss2 = jax.block_until_ready(loss2)
    ref2 = _reference_loss(cls2, pb2, tc2, tbx2, lambda_reg=0.5)
    assert np.allclose(np.asarray(loss2), np.asarray(ref2), rtol=1e-5, atol=1e-5), (loss2, ref2)

    print("KERNEL_OK")
</pallas_src>

<mosaic_0001>
module attributes {stable_mosaic.version = 11 : i64} {
  func.func @_detection_loss_kernel(%arg0: i32, %arg1: memref<128x8xf32, #tpu.memory_space<vmem>>, %arg2: memref<128x4xf32, #tpu.memory_space<vmem>>, %arg3: memref<128x6xi32, #tpu.memory_space<vmem>>, %arg4: memref<128x24xf32, #tpu.memory_space<vmem>>, %arg5: memref<1x1xf32, #tpu.memory_space<vmem>>, %arg6: memref<128x1xf32, #tpu.memory_space<vmem>>, %arg7: memref<128x4xf32, #tpu.memory_space<vmem>>) attributes {dimension_semantics = [#tpu.dimension_semantics<arbitrary>], iteration_bounds = array<i64: 1>, scalar_prefetch = 0 : i64, scratch_operands = 2 : i64, tpu.core_type = #tpu.core_type<tc>, window_params = [{transform_indices = @transform_0, window_bounds = array<i64: 128, 8>}, {transform_indices = @transform_1, window_bounds = array<i64: 128, 4>}, {transform_indices = @transform_2, window_bounds = array<i64: 128, 6>}, {transform_indices = @transform_3, window_bounds = array<i64: 128, 24>}, {pipeline_mode = #tpu.pipeline_mode<synchronous>, transform_indices = @transform_4, window_bounds = array<i64: 1, 1>}]} {
    %c0_i32 = arith.constant 0 : i32
    %0 = arith.cmpi eq, %arg0, %c0_i32 : i32
    %1 = arith.extui %0 : i1 to i32
    %c0_i32_0 = arith.constant 0 : i32
    %2 = arith.cmpi ne, %1, %c0_i32_0 : i32
    scf.if %2 {
      %cst_41 = arith.constant 0.000000e+00 : f32
      %129 = vector.broadcast %cst_41 : f32 to vector<128x1xf32>
      %c0_42 = arith.constant 0 : index
      %c0_43 = arith.constant 0 : index
      %130 = vector.load %arg6[%c0_42, %c0_43] : memref<128x1xf32, #tpu.memory_space<vmem>>, vector<128x1xf32>
      tpu.vector_store %arg6[%c0_42, %c0_43], %129 {strides = array<i32>} : memref<128x1xf32, #tpu.memory_space<vmem>>, vector<128x1xf32>,
      %cst_44 = arith.constant 0.000000e+00 : f32
      %131 = vector.broadcast %cst_44 : f32 to vector<128x4xf32>
      %c0_45 = arith.constant 0 : index
      %c0_46 = arith.constant 0 : index
      %132 = vector.load %arg7[%c0_45, %c0_46] : memref<128x4xf32, #tpu.memory_space<vmem>>, vector<128x4xf32>
      tpu.vector_store %arg7[%c0_45, %c0_46], %131 {strides = array<i32>} : memref<128x4xf32, #tpu.memory_space<vmem>>, vector<128x4xf32>,
    } else {
    }
    %c0 = arith.constant 0 : index
    %c0_1 = arith.constant 0 : index
    %3 = vector.load %arg1[%c0, %c0_1] : memref<128x8xf32, #tpu.memory_space<vmem>>, vector<128x8xf32>
    %c0_2 = arith.constant 0 : index
    %c0_3 = arith.constant 0 : index
    %4 = vector.load %arg2[%c0_2, %c0_3] : memref<128x4xf32, #tpu.memory_space<vmem>>, vector<128x4xf32>
    %c0_4 = arith.constant 0 : index
    %c0_5 = arith.constant 0 : index
    %5 = vector.load %arg3[%c0_4, %c0_5] : memref<128x6xi32, #tpu.memory_space<vmem>>, vector<128x6xi32>
    %c0_6 = arith.constant 0 : index
    %c0_7 = arith.constant 0 : index
    %6 = vector.load %arg4[%c0_6, %c0_7] : memref<128x24xf32, #tpu.memory_space<vmem>>, vector<128x24xf32>
    %c128_i32 = arith.constant 128 : i32
    %7 = arith.muli %arg0, %c128_i32 : i32
    %8 = tpu.iota {dimensions = array<i32: 0>} : vector<128x1xi32>
    %9 = vector.broadcast %7 : i32 to vector<128x1xi32>
    %10 = arith.addi %9, %8 : vector<128x1xi32>
    %c4_i32 = arith.constant 4 : i32
    %11 = vector.broadcast %c4_i32 : i32 to vector<128x1xi32>
    %12 = arith.cmpi slt, %10, %11 : vector<128x1xi32>
    %13 = tpu.iota {dimensions = array<i32: 1>} : vector<128x6xi32>
    %c-1_i32 = arith.constant -1 : i32
    %14 = vector.broadcast %c-1_i32 : i32 to vector<128x6xi32>
    %15 = arith.cmpi ne, %5, %14 : vector<128x6xi32>
    %c6_i32 = arith.constant 6 : i32
    %16 = vector.broadcast %c6_i32 : i32 to vector<128x6xi32>
    %17 = arith.select %15, %13, %16 : vector<128x6xi1>, vector<128x6xi32>
    %cst = arith.constant dense<2147483647> : vector<128xi32>
    %18 = vector.multi_reduction <minsi>, %17, %cst [1] : vector<128x6xi32> to vector<128xi32>
    %19 = vector.shape_cast %18 : vector<128xi32> to vector<128x1xi32>
    %c6_i32_8 = arith.constant 6 : i32
    %20 = vector.broadcast %c6_i32_8 : i32 to vector<128x1xi32>
    %21 = arith.cmpi slt, %19, %20 : vector<128x1xi32>
    %c0_i32_9 = arith.constant 0 : i32
    %22 = vector.broadcast %c0_i32_9 : i32 to vector<128x1xi32>
    %23 = arith.select %21, %19, %22 : vector<128x1xi1>, vector<128x1xi32>
    %24 = vector.broadcast %23 : vector<128x1xi32> to vector<128x6xi32>
    %25 = arith.cmpi eq, %13, %24 : vector<128x6xi32>
    %c0_i32_10 = arith.constant 0 : i32
    %26 = vector.broadcast %c0_i32_10 : i32 to vector<128x6xi32>
    %27 = arith.select %25, %5, %26 : vector<128x6xi1>, vector<128x6xi32>
    %cst_11 = arith.constant dense<0> : vector<128xi32>
    %28 = vector.multi_reduction <add>, %27, %cst_11 [1] : vector<128x6xi32> to vector<128xi32>
    %29 = vector.shape_cast %28 : vector<128xi32> to vector<128x1xi32>
    %c0_i32_12 = arith.constant 0 : i32
    %30 = vector.broadcast %c0_i32_12 : i32 to vector<128x1xi32>
    %31 = arith.select %21, %29, %30 : vector<128x1xi1>, vector<128x1xi32>
    %cst_13 = arith.constant 0.000000e+00 : f32
    %32 = vector.broadcast %cst_13 : f32 to vector<128x4xf32>
    %c0_i32_14 = arith.constant 0 : i32
    %33 = vector.broadcast %c0_i32_14 : i32 to vector<128x1xi32>
    %34 = arith.cmpi eq, %23, %33 : vector<128x1xi32>
    %35 = arith.andi %34, %21 : vector<128x1xi1>
    %36 = vector.extract_strided_slice %6 {offsets = [0, 0], sizes = [128, 4], strides = [1, 1]} : vector<128x24xf32> to vector<128x4xf32>
    %cst_15 = arith.constant 0.000000e+00 : f32
    %37 = vector.shape_cast %35 : vector<128x1xi1> to vector<128x1xi1>
    %38 = vector.broadcast %37 : vector<128x1xi1> to vector<128x4xi1>
    %39 = vector.broadcast %cst_15 : f32 to vector<128x4xf32>
    %40 = arith.select %38, %36, %39 : vector<128x4xi1>, vector<128x4xf32>
    %41 = arith.addf %32, %40 : vector<128x4xf32>
    %c1_i32 = arith.constant 1 : i32
    %42 = vector.broadcast %c1_i32 : i32 to vector<128x1xi32>
    %43 = arith.cmpi eq, %23, %42 : vector<128x1xi32>
    %44 = arith.andi %43, %21 : vector<128x1xi1>
    %45 = vector.extract_strided_slice %6 {offsets = [0, 4], sizes = [128, 4], strides = [1, 1]} : vector<128x24xf32> to vector<128x4xf32>
    %cst_16 = arith.constant 0.000000e+00 : f32
    %46 = vector.shape_cast %44 : vector<128x1xi1> to vector<128x1xi1>
    %47 = vector.broadcast %46 : vector<128x1xi1> to vector<128x4xi1>
    %48 = vector.broadcast %cst_16 : f32 to vector<128x4xf32>
    %49 = arith.select %47, %45, %48 : vector<128x4xi1>, vector<128x4xf32>
    %50 = arith.addf %41, %49 : vector<128x4xf32>
    %c2_i32 = arith.constant 2 : i32
    %51 = vector.broadcast %c2_i32 : i32 to vector<128x1xi32>
    %52 = arith.cmpi eq, %23, %51 : vector<128x1xi32>
    %53 = arith.andi %52, %21 : vector<128x1xi1>
    %54 = vector.extract_strided_slice %6 {offsets = [0, 8], sizes = [128, 4], strides = [1, 1]} : vector<128x24xf32> to vector<128x4xf32>
    %cst_17 = arith.constant 0.000000e+00 : f32
    %55 = vector.shape_cast %53 : vector<128x1xi1> to vector<128x1xi1>
    %56 = vector.broadcast %55 : vector<128x1xi1> to vector<128x4xi1>
    %57 = vector.broadcast %cst_17 : f32 to vector<128x4xf32>
    %58 = arith.select %56, %54, %57 : vector<128x4xi1>, vector<128x4xf32>
    %59 = arith.addf %50, %58 : vector<128x4xf32>
    %c3_i32 = arith.constant 3 : i32
    %60 = vector.broadcast %c3_i32 : i32 to vector<128x1xi32>
    %61 = arith.cmpi eq, %23, %60 : vector<128x1xi32>
    %62 = arith.andi %61, %21 : vector<128x1xi1>
    %63 = vector.extract_strided_slice %6 {offsets = [0, 12], sizes = [128, 4], strides = [1, 1]} : vector<128x24xf32> to vector<128x4xf32>
    %cst_18 = arith.constant 0.000000e+00 : f32
    %64 = vector.shape_cast %62 : vector<128x1xi1> to vector<128x1xi1>
    %65 = vector.broadcast %64 : vector<128x1xi1> to vector<128x4xi1>
    %66 = vector.broadcast %cst_18 : f32 to vector<128x4xf32>
    %67 = arith.select %65, %63, %66 : vector<128x4xi1>, vector<128x4xf32>
    %68 = arith.addf %59, %67 : vector<128x4xf32>
    %c4_i32_19 = arith.constant 4 : i32
    %69 = vector.broadcast %c4_i32_19 : i32 to vector<128x1xi32>
    %70 = arith.cmpi eq, %23, %69 : vector<128x1xi32>
    %71 = arith.andi %70, %21 : vector<128x1xi1>
    %72 = vector.extract_strided_slice %6 {offsets = [0, 16], sizes = [128, 4], strides = [1, 1]} : vector<128x24xf32> to vector<128x4xf32>
    %cst_20 = arith.constant 0.000000e+00 : f32
    %73 = vector.shape_cast %71 : vector<128x1xi1> to vector<128x1xi1>
    %74 = vector.broadcast %73 : vector<128x1xi1> to vector<128x4xi1>
    %75 = vector.broadcast %cst_20 : f32 to vector<128x4xf32>
    %76 = arith.select %74, %72, %75 : vector<128x4xi1>, vector<128x4xf32>
    %77 = arith.addf %68, %76 : vector<128x4xf32>
    %c5_i32 = arith.constant 5 : i32
    %78 = vector.broadcast %c5_i32 : i32 to vector<128x1xi32>
    %79 = arith.cmpi eq, %23, %78 : vector<128x1xi32>
    %80 = arith.andi %79, %21 : vector<128x1xi1>
    %81 = vector.extract_strided_slice %6 {offsets = [0, 20], sizes = [128, 4], strides = [1, 1]} : vector<128x24xf32> to vector<128x4xf32>
    %cst_21 = arith.constant 0.000000e+00 : f32
    %82 = vector.shape_cast %80 : vector<128x1xi1> to vector<128x1xi1>
    %83 = vector.broadcast %82 : vector<128x1xi1> to vector<128x4xi1>
    %84 = vector.broadcast %cst_21 : f32 to vector<128x4xf32>
    %85 = arith.select %83, %81, %84 : vector<128x4xi1>, vector<128x4xf32>
    %86 = arith.addf %77, %85 : vector<128x4xf32>
    %cst_22 = arith.constant dense<0xFF800000> : vector<128xf32>
    %87 = vector.multi_reduction <maximumf>, %3, %cst_22 [1] : vector<128x8xf32> to vector<128xf32>
    %88 = vector.shape_cast %87 : vector<128xf32> to vector<128x1xf32>
    %89 = vector.broadcast %88 : vector<128x1xf32> to vector<128x8xf32>
    %90 = arith.subf %3, %89 : vector<128x8xf32>
    %91 = math.exp %90 : vector<128x8xf32>
    %cst_23 = arith.constant dense<0.000000e+00> : vector<128xf32>
    %92 = vector.multi_reduction <add>, %91, %cst_23 [1] : vector<128x8xf32> to vector<128xf32>
    %93 = vector.shape_cast %92 : vector<128xf32> to vector<128x1xf32>
    %94 = math.log %93 : vector<128x1xf32>
    %95 = arith.addf %88, %94 : vector<128x1xf32>
    %96 = tpu.iota {dimensions = array<i32: 1>} : vector<128x8xi32>
    %97 = vector.broadcast %31 : vector<128x1xi32> to vector<128x8xi32>
    %98 = arith.cmpi eq, %96, %97 : vector<128x8xi32>
    %cst_24 = arith.constant 0.000000e+00 : f32
    %99 = vector.broadcast %cst_24 : f32 to vector<128x8xf32>
    %100 = arith.select %98, %3, %99 : vector<128x8xi1>, vector<128x8xf32>
    %cst_25 = arith.constant dense<0.000000e+00> : vector<128xf32>
    %101 = vector.multi_reduction <add>, %100, %cst_25 [1] : vector<128x8xf32> to vector<128xf32>
    %102 = vector.shape_cast %101 : vector<128xf32> to vector<128x1xf32>
    %103 = arith.subf %95, %102 : vector<128x1xf32>
    %cst_26 = arith.constant 0.000000e+00 : f32
    %104 = vector.broadcast %cst_26 : f32 to vector<128x1xf32>
    %105 = arith.select %12, %103, %104 : vector<128x1xi1>, vector<128x1xf32>
    %106 = arith.subf %4, %86 : vector<128x4xf32>
    %107 = math.absf %106 : vector<128x4xf32>
    %cst_27 = arith.constant 1.000000e+00 : f32
    %108 = vector.broadcast %cst_27 : f32 to vector<128x4xf32>
    %109 = arith.cmpf olt, %107, %108 : vector<128x4xf32>
    %cst_28 = arith.constant 5.000000e-01 : f32
    %110 = vector.broadcast %cst_28 : f32 to vector<128x4xf32>
    %111 = arith.mulf %110, %107 : vector<128x4xf32>
    %112 = arith.mulf %111, %107 : vector<128x4xf32>
    %cst_29 = arith.constant 5.000000e-01 : f32
    %113 = vector.broadcast %cst_29 : f32 to vector<128x4xf32>
    %114 = arith.subf %107, %113 : vector<128x4xf32>
    %115 = arith.select %109, %112, %114 : vector<128x4xi1>, vector<128x4xf32>
    %cst_30 = arith.constant 0.000000e+00 : f32
    %116 = vector.shape_cast %12 : vector<128x1xi1> to vector<128x1xi1>
    %117 = vector.broadcast %116 : vector<128x1xi1> to vector<128x4xi1>
    %118 = vector.broadcast %cst_30 : f32 to vector<128x4xf32>
    %119 = arith.select %117, %115, %118 : vector<128x4xi1>, vector<128x4xf32>
    %c0_31 = arith.constant 0 : index
    %c0_32 = arith.constant 0 : index
    %120 = vector.load %arg6[%c0_31, %c0_32] : memref<128x1xf32, #tpu.memory_space<vmem>>, vector<128x1xf32>
    %121 = arith.addf %120, %105 : vector<128x1xf32>
    %c0_33 = arith.constant 0 : index
    %c0_34 = arith.constant 0 : index
    %122 = vector.load %arg6[%c0_33, %c0_34] : memref<128x1xf32, #tpu.memory_space<vmem>>, vector<128x1xf32>
    tpu.vector_store %arg6[%c0_33, %c0_34], %121 {strides = array<i32>} : memref<128x1xf32, #tpu.memory_space<vmem>>, vector<128x1xf32>,
    %c0_35 = arith.constant 0 : index
    %c0_36 = arith.constant 0 : index
    %123 = vector.load %arg7[%c0_35, %c0_36] : memref<128x4xf32, #tpu.memory_space<vmem>>, vector<128x4xf32>
    %124 = arith.addf %123, %119 : vector<128x4xf32>
    %c0_37 = arith.constant 0 : index
    %c0_38 = arith.constant 0 : index
    %125 = vector.load %arg7[%c0_37, %c0_38] : memref<128x4xf32, #tpu.memory_space<vmem>>, vector<128x4xf32>
    tpu.vector_store %arg7[%c0_37, %c0_38], %124 {strides = array<i32>} : memref<128x4xf32, #tpu.memory_space<vmem>>, vector<128x4xf32>,
    %c0_i32_39 = arith.constant 0 : i32
    %126 = arith.cmpi eq, %arg0, %c0_i32_39 : i32
    %127 = arith.extui %126 : i1 to i32
    %c0_i32_40 = arith.constant 0 : i32
    %128 = arith.cmpi ne, %127, %c0_i32_40 : i32
    scf.if %128 {
      %c0_41 = arith.constant 0 : index
      %c0_42 = arith.constant 0 : index
      %129 = vector.load %arg6[%c0_41, %c0_42] : memref<128x1xf32, #tpu.memory_space<vmem>>, vector<128x1xf32>
      %cst_43 = arith.constant dense<0.000000e+00> : vector<1xf32>
      %130 = vector.multi_reduction <add>, %129, %cst_43 [0] : vector<128x1xf32> to vector<1xf32>
      %131 = vector.shape_cast %130 : vector<1xf32> to vector<1x1xf32>
      %c0_44 = arith.constant 0 : index
      %c0_45 = arith.constant 0 : index
      %132 = vector.load %arg7[%c0_44, %c0_45] : memref<128x4xf32, #tpu.memory_space<vmem>>, vector<128x4xf32>
      %cst_46 = arith.constant dense<0.000000e+00> : vector<128xf32>
      %133 = vector.multi_reduction <add>, %132, %cst_46 [1] : vector<128x4xf32> to vector<128xf32>
      %134 = vector.shape_cast %133 : vector<128xf32> to vector<128x1xf32>
      %cst_47 = arith.constant dense<0.000000e+00> : vector<1xf32>
      %135 = vector.multi_reduction <add>, %134, %cst_47 [0] : vector<128x1xf32> to vector<1xf32>
      %136 = vector.shape_cast %135 : vector<1xf32> to vector<1x1xf32>
      %cst_48 = arith.constant 2.500000e-01 : f32
      %137 = vector.broadcast %cst_48 : f32 to vector<1x1xf32>
      %138 = arith.mulf %131, %137 : vector<1x1xf32>
      %cst_49 = arith.constant 6.250000e-02 : f32
      %139 = vector.broadcast %cst_49 : f32 to vector<1x1xf32>
      %140 = arith.mulf %136, %139 : vector<1x1xf32>
      %cst_50 = arith.constant 1.000000e+00 : f32
      %141 = vector.broadcast %cst_50 : f32 to vector<1x1xf32>
      %142 = arith.mulf %141, %140 : vector<1x1xf32>
      %143 = arith.addf %138, %142 : vector<1x1xf32>
      %c0_51 = arith.constant 0 : index
      %c0_52 = arith.constant 0 : index
      %144 = vector.load %arg5[%c0_51, %c0_52] : memref<1x1xf32, #tpu.memory_space<vmem>>, vector<1x1xf32>
      tpu.vector_store %arg5[%c0_51, %c0_52], %143 {strides = array<i32>} : memref<1x1xf32, #tpu.memory_space<vmem>>, vector<1x1xf32>,
    } else {
    }
    return
  }
  func.func @transform_0(%arg0: i32) -> (i32, i32) {
    %c0_i32 = arith.constant 0 : i32
    %c0_i32_0 = arith.constant 0 : i32
    return %arg0, %c0_i32 : i32, i32
  }
  func.func @transform_1(%arg0: i32) -> (i32, i32) {
    %c0_i32 = arith.constant 0 : i32
    %c0_i32_0 = arith.constant 0 : i32
    return %arg0, %c0_i32 : i32, i32
  }
  func.func @transform_2(%arg0: i32) -> (i32, i32) {
    %c0_i32 = arith.constant 0 : i32
    %c0_i32_0 = arith.constant 0 : i32
    return %arg0, %c0_i32 : i32, i32
  }
  func.func @transform_3(%arg0: i32) -> (i32, i32) {
    %c0_i32 = arith.constant 0 : i32
    %c0_i32_0 = arith.constant 0 : i32
    return %arg0, %c0_i32 : i32, i32
  }
  func.func @transform_4(%arg0: i32) -> (i32, i32) {
    %c0_i32 = arith.constant 0 : i32
    %c0_i32_0 = arith.constant 0 : i32
    %c0_i32_1 = arith.constant 0 : i32
    return %c0_i32, %c0_i32_0 : i32, i32
  }
}

</mosaic_0001>

<bundles_post_ra>
// kernel: tpu_custom_call.1
= control target key start
LH: loop header
LB: loop body
LE: loop exit
PB: predicated region body
PF: predicated region fallthrough
CT: control target
= control target key end

     0   :  { %9 = vsyncpa [#allocation5], 0  ;;  %s2758_s0 = inlined_call_operand.hbm [shape: f32[4,8], index: 0, kind: input, shape index: {}]   ;;  %s2759_s1 = inlined_call_operand.hbm [shape: f32[4,4], index: 1, kind: input, shape index: {}]   ;;  %s2760_s2 = inlined_call_operand.vmem [shape: s32[4,6], index: 2, kind: input, shape index: {}]   ;;  %s2761_s3 = inlined_call_operand.vmem [shape: f32[4,24], index: 3, kind: input, shape index: {}]   ;;  %s2762_s4 = inlined_call_operand.hbm [shape: f32[1,1], index: 4, kind: output, shape index: {}]  }
   0x1   :  { %10 = vsyncpa [#allocation8], 0 }
   0x2   :  { %11 = vsyncpa [#allocation6], 0 }
   0x3   :  { %16 = vsyncadd [#allocation5], 1984  ;;  %s2486_s15 = smov [#allocation4]   ;;  %s2414_s19 = scalar_lea.hbm %s2758_s0, 64 }
   0x4   :  { %s17_s16 = sshll.u32 %s2486_s15, 4  ;;  %p2415_p0 = scmp.ne.s32.totalorder %s2758_s0, %s2414_s19  ;;  %s18_s16 = int_to_ptr.vmem [resolvable:$true] %s17_s16 }
   0x5   :  { %p2418_p1 = scmp.lt.u32.totalorder %s2414_s19, %s2758_s0 }
   0x7   :  { %p2420_p2 = pnand %p2418_p1, %p2415_p0 }
   0x9   :  { %2423 = shalt.err (!%p2420_p2)
}
   0xa   :  { %s2424_s24 = scalar_lea.vmem %s18_s16, 64  ;;  %s2428_s25 = scalar_lea.vmem %s18_s16, 2048 }
   0xb   :  { %p2425_p3 = scmp.ne.s32.totalorder %s18_s16, %s2424_s24  ;;  %p2429_p4 = scmp.lt.s32.totalorder %s18_s16, %s18_s16 }
   0xc   :  { %p2430_p5 = scmp.lt.s32.totalorder %s2428_s25, %s2424_s24 }
   0xe   :  { %p2431_p6 = por %p2430_p5, %p2429_p4 }
  0x10   :  { %p2432_p7 = pnand %p2431_p6, %p2425_p3 }
  0x12   :  { %2435 = shalt.err (!%p2432_p7)
}
  0x13   :  { %s2487_s26 = smov 64   ;;  %s2488_s27 = smov 4  }
  0x14   :  { %23 = dma.hbm_to_vmem [thread:$0]  %s2758_s0, 64, %s18_s16, [#allocation5], %s2487_s26, %s2487_s26, %s2488_s27  }
  0x15   :  { %28 = vsyncadd [#allocation8], 1984  ;;  %s2489_s30 = smov [#allocation7]   ;;  %s2436_s8 = scalar_lea.hbm %s2759_s1, 64 }
  0x16   :  { %s29_s5 = sshll.u32 %s2489_s30, 4  ;;  %p2437_p8 = scmp.ne.s32.totalorder %s2759_s1, %s2436_s8  ;;  %s30_s5 = int_to_ptr.vmem [resolvable:$true] %s29_s5 }
  0x17   :  { %p2440_p9 = scmp.lt.u32.totalorder %s2436_s8, %s2759_s1 }
  0x19   :  { %p2442_p10 = pnand %p2440_p9, %p2437_p8 }
  0x1b   :  { %2445 = shalt.err (!%p2442_p10)
}
  0x1c   :  { %s2446_s13 = scalar_lea.vmem %s30_s5, 64  ;;  %s2450_s0 = scalar_lea.vmem %s30_s5, 2048 }
  0x1d   :  { %p2447_p11 = scmp.ne.s32.totalorder %s30_s5, %s2446_s13  ;;  %p2451_p12 = scmp.lt.s32.totalorder %s30_s5, %s30_s5 }
  0x1e   :  { %p2452_p13 = scmp.lt.s32.totalorder %s2450_s0, %s2446_s13 }
  0x20   :  { %p2453_p0 = por %p2452_p13, %p2451_p12 }
  0x22   :  { %p2454_p1 = pnand %p2453_p0, %p2447_p11 }
  0x24   :  { %2457 = shalt.err (!%p2454_p1)
}
  0x25   :  { %35 = dma.hbm_to_vmem [thread:$0]  %s2759_s1, 64, %s30_s5, [#allocation8], %s2487_s26, %s2487_s26, %s2488_s27  }
  0x26   :  { %2480 = dma.done.wait [#allocation5], 2048  }
  0x27   :  { %2481 = vsyncadd [#allocation5], 4294965248 }
  0x28   :  { %2482 = dma.done.wait [#allocation8], 2048  }
  0x29   :  { %2483 = vsyncadd [#allocation8], 4294965248  ;;  %v149_v0 = vlaneseq  ;;  %v116_v2 = vld [vmem:[%s2760_s2] sm:$0xff]  ;;  %vm233_vm0 = vcmask 48128   ;;  %vm1658_vm2 = vcmask 64512   ;;  %s2490_s18 = smov 124  }
  0x2a   :  { %vm201_vm1 = vcmp.ne.s32.totalorder %v116_v2, 4294967295  ;;  %v2554_v7 = vld [vmem:[#allocation4] sm:$0xff]  ;;  %s2492_s19 = smov 116   ;;  %s2493_s20 = smov 112   ;;  %v2495_v38 = vmov 0.0  }
  0x2b   :  { %v2547_v1 = vand.u32 127, %v149_v0  ;;  %v1659_v8 = vsel %vm1658_vm2, %v2554_v7, -inf  ;;  %v2567_v19 = vld [vmem:[%s2761_s3] sm:$0xff]  ;;  %s2491_s3 = smov 120   ;;  %s2494_s21 = smov 108  }
  0x2c   :  { %1660 = vmax.xlane.f32.xlu1 %v1659_v8  ;;  %s2496_s22 = smov [#allocation9]  }
  0x2d   :  { %v217_v3 = vsel %vm201_vm1, %v2547_v1, 6  ;;  %s2373_s23 = sshll.u32 %s2496_s22, 4  ;;  %s2374_s23 = int_to_ptr.vmem [resolvable:$true] %s2373_s23 }
  0x2e   :  { %v234_v4 = vsel %vm233_vm0, %v217_v3, 2147483647  ;;  %s2458_s24 = scalar_lea.vmem %s2374_s23, 16  ;;  %s2462_s25 = scalar_lea.vmem %s2374_s23, 32 }
  0x2f   :  { %v236_v5 = vshra.s32 %v234_v4, 16  ;;  %v235_v9 = vand.u32 65535, %v234_v4  ;;  %p2459_p2 = scmp.ne.s32.totalorder %s2374_s23, %s2458_s24  ;;  %p2463_p3 = scmp.lt.s32.totalorder %s2374_s23, %s2374_s23 }
  0x30   :  { %p2464_p4 = scmp.lt.s32.totalorder %s2462_s25, %s2458_s24 }
  0x31   :  { %v238_v6 = vcvt.s32.f32 %v236_v5  ;;  %v237_v10 = vcvt.s32.f32 %v235_v9 }
  0x32   :  { %p2465_p5 = por %p2464_p4, %p2463_p3 }
  0x33   :  { %239 = vmin.xlane.f32.xlu0 %v238_v6 }
  0x34   :  { %p2466_p6 = pnand %p2465_p5, %p2459_p2 }
  0xb9   :  { %v2586_v29 = vpop.xlane.xlu1 %1660 }
  0xba   :  { %v1707_v30 = vsub.f32 %v2554_v7, %v2586_v29 }
  0xbc   :  { %v1723_v32 = vmul.f32 1.442695, %v1707_v30 }
  0xbe   :  { %2410 = vpow2.f32 %v1723_v32 }
  0xc0   :  { %v240_v11 = vpop.xlane.xlu0 %239 }
  0xc1   :  { %vm241_vm3 = vcmp.eq.f32.partialorder %v238_v6, %v240_v11  ;;  %v246_v13 = vcvt.f32.s32 %v240_v11  ;;  %v100_v11 = vld [vmem:[#allocation7] sm:$0xff] }
  0xc2   :  { %v242_v12 = vsel %vm241_vm3, %v237_v10, inf  ;;  %vm67_vm3 = vcmask 31744  }
  0xc3   :  { %243 = vmin.xlane.f32.xlu0 %v242_v12  ;;  %v247_v15 = vshll.u32 %v246_v13, 16  ;;  %68 = vst.msk [vmem:[#allocation3] sm:$0xff] %vm67_vm3, %v2495_v38  ;;  %69 = vst.msk [vmem:[#allocation3 + $0x8] sm:$0xff] %vm67_vm3, %v2495_v38 }
  0xc4   :  { %70 = vst.msk [vmem:[#allocation3 + $0x10] sm:$0xff] %vm67_vm3, %v2495_v38  ;;  %71 = vst.msk [vmem:[#allocation3 + $0x18] sm:$0xff] %vm67_vm3, %v2495_v38 }
  0xc5   :  { %72 = vst.msk [vmem:[#allocation3 + $0x20] sm:$0xff] %vm67_vm3, %v2495_v38  ;;  %73 = vst.msk [vmem:[#allocation3 + $0x28] sm:$0xff] %vm67_vm3, %v2495_v38 }
  0xc6   :  { %74 = vst.msk [vmem:[#allocation3 + $0x30] sm:$0xff] %vm67_vm3, %v2495_v38  ;;  %75 = vst.msk [vmem:[#allocation3 + $0x38] sm:$0xff] %vm67_vm3, %v2495_v38 }
  0xc7   :  { %76 = vst.msk [vmem:[#allocation3 + $0x40] sm:$0xff] %vm67_vm3, %v2495_v38  ;;  %77 = vst.msk [vmem:[#allocation3 + $0x48] sm:$0xff] %vm67_vm3, %v2495_v38 }
  0xc8   :  { %v2411_v33 = vpop.eup %2410  ;;  %78 = vst.msk [vmem:[#allocation3 + $0x50] sm:$0xff] %vm67_vm3, %v2495_v38  ;;  %79 = vst.msk [vmem:[#allocation3 + $0x58] sm:$0xff] %vm67_vm3, %v2495_v38 }
  0xc9   :  { %v1755_v35 = vsel %vm1658_vm2, %v2411_v33, 0.0  ;;  %80 = vst.msk [vmem:[#allocation3 + $0x60] sm:$0xff] %vm67_vm3, %v2495_v38  ;;  %81 = vst.msk [vmem:[#allocation3 + $0x68] sm:$0xff] %vm67_vm3, %v2495_v38 }
  0xca   :  { %82 = vst.msk [vmem:[#allocation3 + $0x70] sm:$0xff] %vm67_vm3, %v2495_v38  ;;  %83 = vst.msk [vmem:[#allocation3 + $0x78] sm:$0xff] %vm67_vm3, %v2495_v38  ;;  %v2173_v39 = vld [vmem:[#allocation3 + $0x8] sm:$0xff] }
  0xcb   :  { %2206 = vst.msk [vmem:[#allocation3 + $0x8] sm:$0xff] %vm67_vm3, %v2173_v39  ;;  %v2174_v40 = vld [vmem:[#allocation3 + $0x10] sm:$0xff]  ;;  %v2175_v41 = vld [vmem:[#allocation3 + $0x18] sm:$0xff] }
  0xcc   :  { %2207 = vst.msk [vmem:[#allocation3 + $0x10] sm:$0xff] %vm67_vm3, %v2174_v40  ;;  %2208 = vst.msk [vmem:[#allocation3 + $0x18] sm:$0xff] %vm67_vm3, %v2175_v41  ;;  %v2176_v42 = vld [vmem:[#allocation3 + $0x20] sm:$0xff]  ;;  %v2177_v43 = vld [vmem:[#allocation3 + $0x28] sm:$0xff] }
  0xcd   :  { %2209 = vst.msk [vmem:[#allocation3 + $0x20] sm:$0xff] %vm67_vm3, %v2176_v42  ;;  %2210 = vst.msk [vmem:[#allocation3 + $0x28] sm:$0xff] %vm67_vm3, %v2177_v43  ;;  %v2178_v44 = vld [vmem:[#allocation3 + $0x30] sm:$0xff]  ;;  %v2179_v45 = vld [vmem:[#allocation3 + $0x38] sm:$0xff] }
  0xce   :  { %2211 = vst.msk [vmem:[#allocation3 + $0x30] sm:$0xff] %vm67_vm3, %v2178_v44  ;;  %2212 = vst.msk [vmem:[#allocation3 + $0x38] sm:$0xff] %vm67_vm3, %v2179_v45  ;;  %v2180_v46 = vld [vmem:[#allocation3 + $0x40] sm:$0xff]  ;;  %v2181_v47 = vld [vmem:[#allocation3 + $0x48] sm:$0xff] }
  0xcf   :  { %2213 = vst.msk [vmem:[#allocation3 + $0x40] sm:$0xff] %vm67_vm3, %v2180_v46  ;;  %2214 = vst.msk [vmem:[#allocation3 + $0x48] sm:$0xff] %vm67_vm3, %v2181_v47  ;;  %v2182_v48 = vld [vmem:[#allocation3 + $0x50] sm:$0xff]  ;;  %v2183_v49 = vld [vmem:[#allocation3 + $0x58] sm:$0xff] }
  0xd0   :  { %2215 = vst.msk [vmem:[#allocation3 + $0x50] sm:$0xff] %vm67_vm3, %v2182_v48  ;;  %2216 = vst.msk [vmem:[#allocation3 + $0x58] sm:$0xff] %vm67_vm3, %v2183_v49  ;;  %v2184_v50 = vld [vmem:[#allocation3 + $0x60] sm:$0xff]  ;;  %v2185_v51 = vld [vmem:[#allocation3 + $0x68] sm:$0xff] }
  0xd1   :  { %2217 = vst.msk [vmem:[#allocation3 + $0x60] sm:$0xff] %vm67_vm3, %v2184_v50  ;;  %2218 = vst.msk [vmem:[#allocation3 + $0x68] sm:$0xff] %vm67_vm3, %v2185_v51  ;;  %v2186_v52 = vld [vmem:[#allocation3 + $0x70] sm:$0xff]  ;;  %v2187_v53 = vld [vmem:[#allocation3 + $0x78] sm:$0xff] }
  0xd2   :  { %2219 = vst.msk [vmem:[#allocation3 + $0x70] sm:$0xff] %vm67_vm3, %v2186_v52  ;;  %2220 = vst.msk [vmem:[#allocation3 + $0x78] sm:$0xff] %vm67_vm3, %v2187_v53 }
  0xd3   :  { %v2280_v8 = vld [vmem:[#allocation3 + $0x18] sm:$0xff]  ;;  %v2279_v41 = vld [vmem:[#allocation3 + $0x10] sm:$0xff] }
  0xd4   :  { %v2302_v13 = vsel %vm67_vm3, %v2280_v8, 0.0  ;;  %v2299_v44 = vsel %vm67_vm3, %v2279_v41, 0.0  ;;  %v2281_v45 = vld [vmem:[#allocation3 + $0x20] sm:$0xff] }
  0xd5   :  { %v2305_v48 = vsel %vm67_vm3, %v2281_v45, 0.0  ;;  %v2283_v49 = vld [vmem:[#allocation3 + $0x30] sm:$0xff] }
  0xd6   :  { %v2311_v52 = vsel %vm67_vm3, %v2283_v49, 0.0  ;;  %v2285_v53 = vld [vmem:[#allocation3 + $0x40] sm:$0xff] }
  0xd9   :  { %v2292_v33 = vld [vmem:[#allocation3 + $0x78] sm:$0xff] }
 0x150   :  { %v244_v14 = vpop.xlane.xlu0 %243 }
 0x151   :  { %v245_v16 = vcvt.f32.s32 %v244_v14 }
 0x153   :  { %v2558_v17 = vadd.s32 %v247_v15, %v245_v16  ;;  %v2282_v15 = vld [vmem:[#allocation3 + $0x28] sm:$0xff] }
 0x155   :  { %vm474_vm4 = vcmp.lt.s32.totalorder %v2558_v17, 6 }
 0x156   :  { %v490_v18 = vsel %vm474_vm4, %v2558_v17, 0  ;;  %v2308_v17 = vsel %vm67_vm3, %v2282_v15, 0.0 }
 0x157   :  { %vm858_vm5 = vcmp.eq.s32.totalorder %v490_v18, 1  ;;  %vm506_vm6 = vcmp.eq.s32.totalorder %v2547_v1, %v490_v18  ;;  %vm762_vm8 = vcmp.eq.s32.totalorder %v490_v18, 0  ;;  %vm1018_vm10 = vcmp.eq.s32.totalorder %v490_v18, 2 }
 0x158   :  { %vm874_vm7 = vmand %vm858_vm5, %vm474_vm4  ;;  %v522_v20 = vsel %vm506_vm6, %v116_v2, 0  ;;  %vm1178_vm12 = vcmp.eq.s32.totalorder %v490_v18, 3  ;;  %vm1338_vm14 = vcmp.eq.s32.totalorder %v490_v18, 4  ;;  %vm50_vm5 = vcmask 7168  }
 0x159   :  { %v922_v21 = vsel %vm874_vm7, %v2567_v19, 0.0  ;;  %v538_v22 = vsel %vm233_vm0, %v522_v20, 0  ;;  %vm2576_vm9 = vmand %vm762_vm8, %vm474_vm4  ;;  %vm1498_vm0 = vcmp.eq.s32.totalorder %v490_v18, 5  ;;  %51 = vst.msk [vmem:[#allocation2] sm:$0xff] %vm50_vm5, %v2495_v38  ;;  %vm2365_vm7 = vcmask 0  }
 0x15a   :  { %954 = vrot.lane.b32.xlu1 %v922_v21, %s2490_s18  ;;  %v539_v23 = vand.u32 65535, %v538_v22  ;;  %v826_v26 = vsel %vm2576_vm9, %v2567_v19, 0.0  ;;  %vm1034_vm11 = vmand %vm1018_vm10, %vm474_vm4  ;;  %v540_v28 = vshrl.u32 %v538_v22, 16  ;;  %52 = vst.msk [vmem:[#allocation2 + $0x8] sm:$0xff] %vm50_vm5, %v2495_v38 }
 0x15b   :  { %v1082_v27 = vsel %vm1034_vm11, %v2567_v19, 0.0  ;;  %vm1194_vm13 = vmand %vm1178_vm12, %vm474_vm4  ;;  %53 = vst.msk [vmem:[#allocation2 + $0x10] sm:$0xff] %vm50_vm5, %v2495_v38 }
 0x15c   :  { %v541_v24 = vcvt.s32.f32 %v539_v23  ;;  %v542_v31 = vcvt.s32.f32 %v540_v28  ;;  %v1242_v34 = vsel %vm1194_vm13, %v2567_v19, 0.0  ;;  %vm1354_vm15 = vmand %vm1338_vm14, %vm474_vm4  ;;  %54 = vst.msk [vmem:[#allocation2 + $0x18] sm:$0xff] %vm50_vm5, %v2495_v38  ;;  %v2286_v23 = vld [vmem:[#allocation3 + $0x48] sm:$0xff]  ;;  %v2288_v28 = vld [vmem:[#allocation3 + $0x58] sm:$0xff] }
 0x15d   :  { %v1402_v36 = vsel %vm1354_vm15, %v2567_v19, 0.0  ;;  %vm1514_vm1 = vmand %vm1498_vm0, %vm474_vm4  ;;  %55 = vst.msk [vmem:[#allocation2 + $0x20] sm:$0xff] %vm50_vm5, %v2495_v38  ;;  %v2326_v30 = vsel %vm67_vm3, %v2288_v28, 0.0 }
 0x15e   :  { %543 = vadd.xlane.f32.xlu0 %v541_v24  ;;  %v1562_v37 = vsel %vm1514_vm1, %v2567_v19, 0.0  ;;  %56 = vst.msk [vmem:[#allocation2 + $0x28] sm:$0xff] %vm50_vm5, %v2495_v38  ;;  %57 = vst.msk [vmem:[#allocation2 + $0x30] sm:$0xff] %vm50_vm5, %v2495_v38  ;;  %v2172_v24 = vld [vmem:[#allocation3] sm:$0xff] }
 0x15f   :  { %58 = vst.msk [vmem:[#allocation2 + $0x38] sm:$0xff] %vm50_vm5, %v2495_v38  ;;  %59 = vst.msk [vmem:[#allocation2 + $0x40] sm:$0xff] %vm50_vm5, %v2495_v38 }
 0x160   :  { %60 = vst.msk [vmem:[#allocation2 + $0x48] sm:$0xff] %vm50_vm5, %v2495_v38  ;;  %61 = vst.msk [vmem:[#allocation2 + $0x50] sm:$0xff] %vm50_vm5, %v2495_v38 }
 0x161   :  { %62 = vst.msk [vmem:[#allocation2 + $0x58] sm:$0xff] %vm50_vm5, %v2495_v38  ;;  %63 = vst.msk [vmem:[#allocation2 + $0x60] sm:$0xff] %vm50_vm5, %v2495_v38 }
 0x162   :  { %64 = vst.msk [vmem:[#allocation2 + $0x68] sm:$0xff] %vm50_vm5, %v2495_v38  ;;  %65 = vst.msk [vmem:[#allocation2 + $0x70] sm:$0xff] %vm50_vm5, %v2495_v38  ;;  %v2125_v39 = vld [vmem:[#allocation2 + $0x10] sm:$0xff] }
 0x163   :  { %66 = vst.msk [vmem:[#allocation2 + $0x78] sm:$0xff] %vm50_vm5, %v2495_v38  ;;  %v2338_v38 = vsel %vm67_vm3, %v2292_v33, 0.0  ;;  %2158 = vst.msk [vmem:[#allocation2 + $0x10] sm:$0xff] %vm50_vm5, %v2125_v39  ;;  %v2126_v42 = vld [vmem:[#allocation2 + $0x18] sm:$0xff] }
 0x164   :  { %2159 = vst.msk [vmem:[#allocation2 + $0x18] sm:$0xff] %vm50_vm5, %v2126_v42  ;;  %v2127_v43 = vld [vmem:[#allocation2 + $0x20] sm:$0xff] }
 0x165   :  { %2160 = vst.msk [vmem:[#allocation2 + $0x20] sm:$0xff] %vm50_vm5, %v2127_v43  ;;  %v2128_v46 = vld [vmem:[#allocation2 + $0x28] sm:$0xff]  ;;  %v2129_v47 = vld [vmem:[#allocation2 + $0x30] sm:$0xff] }
 0x166   :  { %2161 = vst.msk [vmem:[#allocation2 + $0x28] sm:$0xff] %vm50_vm5, %v2128_v46  ;;  %2162 = vst.msk [vmem:[#allocation2 + $0x30] sm:$0xff] %vm50_vm5, %v2129_v47  ;;  %v2130_v50 = vld [vmem:[#allocation2 + $0x38] sm:$0xff]  ;;  %v2131_v51 = vld [vmem:[#allocation2 + $0x40] sm:$0xff] }
 0x167   :  { %2163 = vst.msk [vmem:[#allocation2 + $0x38] sm:$0xff] %vm50_vm5, %v2130_v50  ;;  %2164 = vst.msk [vmem:[#allocation2 + $0x40] sm:$0xff] %vm50_vm5, %v2131_v51 }
 0x16e   :  { %v2232_v33 = vld [vmem:[#allocation2 + $0x40] sm:$0xff] }
 0x16f   :  { %v2255_v39 = vsel %vm50_vm5, %v2232_v33, 0.0 }
 0x174   :  { %1114 = vrot.lane.b32.xlu0 %v1082_v27, %s2491_s3 }
 0x17e   :  { %545 = vadd.xlane.f32.xlu1 %v542_v31  ;;  %v2290_v31 = vld [vmem:[#allocation3 + $0x68] sm:$0xff] }
 0x17f   :  { %v2332_v32 = vsel %vm67_vm3, %v2290_v31, 0.0 }
 0x18f   :  { %1274 = vrot.lane.b32.xlu1 %v1242_v34, %s2492_s19 }
 0x193   :  { %1434 = vrot.lane.b32.xlu1 %v1402_v36, %s2493_s20  ;;  %1756 = vadd.xlane.f32.xlu0 %v1755_v35  ;;  %v2278_v35 = vld [vmem:[#allocation3 + $0x8] sm:$0xff] }
 0x194   :  { %v2124_v36 = vld [vmem:[#allocation2 + $0x8] sm:$0xff]  ;;  %v2296_v40 = vsel %vm67_vm3, %v2278_v35, 0.0 }
 0x195   :  { %2157 = vst.msk [vmem:[#allocation2 + $0x8] sm:$0xff] %vm50_vm5, %v2124_v36 }
 0x197   :  { %1594 = vrot.lane.b32.xlu1 %v1562_v37, %s2494_s21 }
 0x1cc   :  { %v955_v54 = vpop.permute.xlu1 %954 }
 0x1cd   :  { %v1002_v62 = vadd.f32 %v955_v54, %v826_v26  ;;  %v2132_v54 = vld [vmem:[#allocation2 + $0x48] sm:$0xff] }
 0x1ce   :  { %2165 = vst.msk [vmem:[#allocation2 + $0x48] sm:$0xff] %vm50_vm5, %v2132_v54 }
 0x1eb   :  { %v544_v55 = vpop.xlane.xlu0 %543 }
 0x1ec   :  { %v547_v58 = vcvt.f32.s32 %v544_v55  ;;  %v2133_v55 = vld [vmem:[#allocation2 + $0x50] sm:$0xff] }
 0x1ed   :  { %2166 = vst.msk [vmem:[#allocation2 + $0x50] sm:$0xff] %vm50_vm5, %v2133_v55 }
 0x1ef   :  { %v1115_v60 = vpop.permute.xlu0 %1114 }
 0x1f0   :  { %v1162_v2 = vadd.f32 %v1115_v60, %v1002_v62  ;;  %v2136_v62 = vld [vmem:[#allocation2 + $0x68] sm:$0xff] }
 0x1f1   :  { %2169 = vst.msk [vmem:[#allocation2 + $0x68] sm:$0xff] %vm50_vm5, %v2136_v62 }
 0x1f4   :  { %v2234_v41 = vld [vmem:[#allocation2 + $0x50] sm:$0xff] }
 0x1f5   :  { %v2259_v47 = vsel %vm50_vm5, %v2234_v41, 0.0 }
 0x1f8   :  { %v2237_v54 = vld [vmem:[#allocation2 + $0x68] sm:$0xff] }
 0x20b   :  { %v546_v56 = vpop.xlane.xlu1 %545 }
 0x20c   :  { %v548_v57 = vcvt.f32.s32 %v546_v56  ;;  %v2317_v56 = vsel %vm67_vm3, %v2285_v53, 0.0 }
 0x20e   :  { %v549_v59 = vshll.u32 %v548_v57, 16  ;;  %v2287_v57 = vld [vmem:[#allocation3 + $0x50] sm:$0xff] }
 0x20f   :  { %v1275_v61 = vpop.permute.xlu1 %1274  ;;  %v2323_v60 = vsel %vm67_vm3, %v2287_v57, 0.0 }
 0x210   :  { %v550_v63 = vadd.s32 %v549_v59, %v547_v58  ;;  %v1322_v5 = vadd.f32 %v1275_v61, %v1162_v2  ;;  %v2134_v58 = vld [vmem:[#allocation2 + $0x58] sm:$0xff]  ;;  %v2135_v59 = vld [vmem:[#allocation2 + $0x60] sm:$0xff] }
 0x211   :  { %2167 = vst.msk [vmem:[#allocation2 + $0x58] sm:$0xff] %vm50_vm5, %v2134_v58  ;;  %2168 = vst.msk [vmem:[#allocation2 + $0x60] sm:$0xff] %vm50_vm5, %v2135_v59  ;;  %v2289_v61 = vld [vmem:[#allocation3 + $0x60] sm:$0xff] }
 0x212   :  { %v746_v3 = vsel %vm474_vm4, %v550_v63, 0  ;;  %v2137_v63 = vld [vmem:[#allocation2 + $0x70] sm:$0xff]  ;;  %v2329_v2 = vsel %vm67_vm3, %v2289_v61, 0.0  ;;  %v2265_v61 = vsel %vm50_vm5, %v2237_v54, 0.0 }
 0x213   :  { %v1435_v4 = vpop.permute.xlu1 %1434  ;;  %vm1851_vm6 = vcmp.eq.s32.totalorder %v2547_v1, %v746_v3  ;;  %v2691_v1 = vshrl.u32 %v149_v0, 7  ;;  %v2320_v0 = vsel %vm67_vm3, %v2286_v23, 0.0  ;;  %2170 = vst.msk [vmem:[#allocation2 + $0x70] sm:$0xff] %vm50_vm5, %v2137_v63  ;;  %v2291_v3 = vld [vmem:[#allocation3 + $0x70] sm:$0xff] }
 0x214   :  { %v1867_v6 = vsel %vm1851_vm6, %v2554_v7, 0.0  ;;  %v1482_v10 = vadd.f32 %v1435_v4, %v1322_v5  ;;  %v2284_v7 = vld [vmem:[#allocation3 + $0x38] sm:$0xff]  ;;  %v2335_v5 = vsel %vm67_vm3, %v2291_v3, 0.0 }
 0x215   :  { %v1883_v9 = vsel %vm1658_vm2, %v1867_v6, 0.0  ;;  %v2314_v20 = vsel %vm67_vm3, %v2284_v7, 0.0  ;;  %vm183_vm2 = vcmp.lt.s32.totalorder %v2691_v1, 4  ;;  %v2138_v4 = vld [vmem:[#allocation2 + $0x78] sm:$0xff] }
 0x216   :  { %1884 = vadd.xlane.f32.xlu1 %v1883_v9  ;;  %2171 = vst.msk [vmem:[#allocation2 + $0x78] sm:$0xff] %vm50_vm5, %v2138_v4 }
 0x217   :  { %v1595_v12 = vpop.permute.xlu1 %1594 }
 0x218   :  { %v1642_v14 = vadd.f32 %v1595_v12, %v1482_v10  ;;  %v2235_v45 = vld [vmem:[#allocation2 + $0x58] sm:$0xff] }
 0x219   :  { %v2261_v51 = vsel %vm50_vm5, %v2235_v45, 0.0 }
 0x21a   :  { %v1963_v16 = vsub.f32 %v100_v11, %v1642_v14  ;;  %2303 = vadd.xlane.f32.xlu1 %v2302_v13  ;;  %v2123_v13 = vld [vmem:[#allocation2] sm:$0xff] }
 0x21c   :  { %v1979_v18 = vand.u32 2147483647, %v1963_v16  ;;  %v2225_v16 = vld [vmem:[#allocation2 + $0x8] sm:$0xff] }
 0x21e   :  { %v2011_v19 = vmul.f32 0.5, %v1979_v18  ;;  %2309 = vadd.xlane.f32.xlu1 %v2308_v17  ;;  %v2383_v22 = vadd.f32 -0.5, %v1979_v18  ;;  %vm1995_vm4 = vcmp.lt.f32.partialorder %v1979_v18, 1.0  ;;  %v2226_v17 = vld [vmem:[#allocation2 + $0x10] sm:$0xff] }
 0x220   :  { %v2027_v21 = vmul.f32 %v2011_v19, %v1979_v18  ;;  %v1757_v6 = vpop.xlane.xlu0 %1756  ;;  %v2241_v18 = vsel %vm50_vm5, %v2225_v16, 0.0  ;;  %v2227_v19 = vld [vmem:[#allocation2 + $0x18] sm:$0xff] }
 0x221   :  { %2412 = vlog2.f32 %v1757_v6  ;;  %v2245_v23 = vsel %vm50_vm5, %v2227_v19, 0.0 }
 0x222   :  { %v2059_v25 = vsel %vm1995_vm4, %v2027_v21, %v2383_v22  ;;  %2315 = vadd.xlane.f32.xlu1 %v2314_v20  ;;  %v2243_v21 = vsel %vm50_vm5, %v2226_v17, 0.0 }
 0x223   :  { %v2107_v26 = vsel %vm183_vm2, %v2059_v25, 0.0 }
 0x224   :  { %v2188_v27 = vadd.f32 %v2172_v24, %v2107_v26  ;;  %v2229_v24 = vld [vmem:[#allocation2 + $0x28] sm:$0xff]  ;;  %v2230_v26 = vld [vmem:[#allocation2 + $0x30] sm:$0xff] }
 0x226   :  { %2205 = vst.msk [vmem:[#allocation3] sm:$0xff] %vm67_vm3, %v2188_v27  ;;  %2321 = vadd.xlane.f32.xlu1 %v2320_v0  ;;  %v2249_v27 = vsel %vm50_vm5, %v2229_v24, 0.0 }
 0x22a   :  { %2327 = vadd.xlane.f32.xlu1 %v2326_v30  ;;  %v2231_v30 = vld [vmem:[#allocation2 + $0x38] sm:$0xff] }
 0x22b   :  { %v2413_v8 = vpop.eup %2412  ;;  %v2253_v35 = vsel %vm50_vm5, %v2231_v30, 0.0 }
 0x22c   :  { %v1804_v9 = vmul.f32 0.6931472, %v2413_v8  ;;  %v2239_v8 = vld [vmem:[#allocation2 + $0x78] sm:$0xff] }
 0x22d   :  { %v2277_v34 = vld [vmem:[#allocation3] sm:$0xff] }
 0x22e   :  { %v2293_v37 = vsel %vm67_vm3, %v2277_v34, 0.0  ;;  %2333 = vadd.xlane.f32.xlu1 %v2332_v32  ;;  %v1835_v10 = vadd.f32 %v1804_v9, %v2586_v29  ;;  %v2228_v29 = vld [vmem:[#allocation2 + $0x20] sm:$0xff]  ;;  %v2251_v32 = vsel %vm50_vm5, %v2230_v26, 0.0 }
 0x22f   :  { %2294 = vadd.xlane.f32.xlu0 %v2293_v37  ;;  %v2247_v25 = vsel %vm50_vm5, %v2228_v29, 0.0  ;;  %v2233_v37 = vld [vmem:[#allocation2 + $0x48] sm:$0xff] }
 0x230   :  { %v2257_v43 = vsel %vm50_vm5, %v2233_v37, 0.0 }
 0x232   :  { %2339 = vadd.xlane.f32.xlu1 %v2338_v38 }
 0x233   :  { %2297 = vadd.xlane.f32.xlu0 %v2296_v40 }
 0x237   :  { %2300 = vadd.xlane.f32.xlu0 %v2299_v44 }
 0x23b   :  { %2306 = vadd.xlane.f32.xlu0 %v2305_v48  ;;  %v2236_v48 = vld [vmem:[#allocation2 + $0x60] sm:$0xff] }
 0x23c   :  { %v2263_v57 = vsel %vm50_vm5, %v2236_v48, 0.0 }
 0x23f   :  { %2312 = vadd.xlane.f32.xlu0 %v2311_v52 }
 0x243   :  { %2318 = vadd.xlane.f32.xlu0 %v2317_v56 }
 0x247   :  { %2324 = vadd.xlane.f32.xlu0 %v2323_v60  ;;  %v2238_v60 = vld [vmem:[#allocation2 + $0x70] sm:$0xff] }
 0x24b   :  { %2330 = vadd.xlane.f32.xlu0 %v2329_v2 }
 0x24f   :  { %2336 = vadd.xlane.f32.xlu0 %v2335_v5  ;;  %v2267_v5 = vsel %vm50_vm5, %v2238_v60, 0.0 }
 0x2a3   :  { %v1885_v11 = vpop.xlane.xlu1 %1884 }
 0x2a4   :  { %v1931_v12 = vsub.f32 %v1835_v10, %v1885_v11 }
 0x2a6   :  { %v1947_v14 = vsel %vm183_vm2, %v1931_v12, 0.0  ;;  %v2269_v12 = vsel %vm50_vm5, %v2239_v8, 0.0 }
 0x2a7   :  { %v2139_v15 = vadd.f32 %v2123_v13, %v1947_v14  ;;  %v2304_v28 = vpop.xlane.xlu1 %2303 }
 0x2a9   :  { %2156 = vst.msk [vmem:[#allocation2] sm:$0xff] %vm50_vm5, %v2139_v15 }
 0x2ab   :  { %v2310_v40 = vpop.xlane.xlu1 %2309 }
 0x2af   :  { %v2316_v53 = vpop.xlane.xlu1 %2315 }
 0x2b0   :  { %v2224_v7 = vld [vmem:[#allocation2] sm:$0xff] }
 0x2b1   :  { %v2240_v20 = vsel %vm50_vm5, %v2224_v7, 0.0 }
 0x2b2   :  { %v2242_v22 = vadd.f32 %v2241_v18, %v2240_v20 }
 0x2b3   :  { %v2322_v3 = vpop.xlane.xlu1 %2321 }
 0x2b4   :  { %v2244_v1 = vadd.f32 %v2243_v21, %v2242_v22 }
 0x2b6   :  { %v2246_v0 = vadd.f32 %v2245_v23, %v2244_v1 }
 0x2b7   :  { %v2328_v15 = vpop.xlane.xlu1 %2327 }
 0x2b8   :  { %v2248_v31 = vadd.f32 %v2247_v25, %v2246_v0 }
 0x2ba   :  { %v2250_v34 = vadd.f32 %v2249_v27, %v2248_v31 }
 0x2bb   :  { %v2334_v21 = vpop.xlane.xlu1 %2333 }
 0x2bc   :  { %v2295_v36 = vpop.xlane.xlu0 %2294  ;;  %v2252_v38 = vadd.f32 %v2251_v32, %v2250_v34 }
 0x2be   :  { %v2254_v42 = vadd.f32 %v2253_v35, %v2252_v38 }
 0x2bf   :  { %v2340_v26 = vpop.xlane.xlu1 %2339 }
 0x2c0   :  { %v2298_v44 = vpop.xlane.xlu0 %2297  ;;  %v2256_v46 = vadd.f32 %v2255_v39, %v2254_v42 }
 0x2c1   :  { %v2341_v50 = vadd.f32 %v2298_v44, %v2295_v36 }
 0x2c2   :  { %v2258_v49 = vadd.f32 %v2257_v43, %v2256_v46 }
 0x2c4   :  { %v2301_v52 = vpop.xlane.xlu0 %2300  ;;  %v2260_v55 = vadd.f32 %v2259_v47, %v2258_v49 }
 0x2c5   :  { %v2342_v56 = vadd.f32 %v2341_v50, %v2301_v52 }
 0x2c6   :  { %v2262_v58 = vadd.f32 %v2261_v51, %v2260_v55 }
 0x2c7   :  { %v2343_v59 = vadd.f32 %v2342_v56, %v2304_v28 }
 0x2c8   :  { %v2307_v62 = vpop.xlane.xlu0 %2306  ;;  %v2264_v63 = vadd.f32 %v2263_v57, %v2262_v58 }
 0x2c9   :  { %v2344_v2 = vadd.f32 %v2343_v59, %v2307_v62 }
 0x2ca   :  { %v2266_v4 = vadd.f32 %v2265_v61, %v2264_v63 }
 0x2cb   :  { %v2345_v6 = vadd.f32 %v2344_v2, %v2310_v40 }
 0x2cc   :  { %v2313_v9 = vpop.xlane.xlu0 %2312  ;;  %v2268_v11 = vadd.f32 %v2267_v5, %v2266_v4 }
 0x2cd   :  { %v2346_v10 = vadd.f32 %v2345_v6, %v2313_v9 }
 0x2ce   :  { %v2270_v17 = vadd.f32 %v2269_v12, %v2268_v11 }
 0x2cf   :  { %v2347_v13 = vadd.f32 %v2346_v10, %v2316_v53 }
 0x2d0   :  { %v2319_v14 = vpop.xlane.xlu0 %2318  ;;  %v2271_v20 = vrot.slane %v2270_v17, 4 }
 0x2d1   :  { %v2348_v16 = vadd.f32 %v2347_v13, %v2319_v14 }
 0x2d2   :  { %v2272_v24 = vadd.f32 %v2271_v20, %v2270_v17 }
 0x2d3   :  { %v2349_v18 = vadd.f32 %v2348_v16, %v2322_v3 }
 0x2d4   :  { %v2325_v7 = vpop.xlane.xlu0 %2324  ;;  %v2273_v27 = vrot.slane %v2272_v24, 2 }
 0x2d5   :  { %v2350_v19 = vadd.f32 %v2349_v18, %v2325_v7 }
 0x2d6   :  { %v2274_v31 = vadd.f32 %v2273_v27, %v2272_v24 }
 0x2d7   :  { %v2351_v29 = vadd.f32 %v2350_v19, %v2328_v15 }
 0x2d8   :  { %v2331_v22 = vpop.xlane.xlu0 %2330  ;;  %v2275_v34 = vrot.slane %v2274_v31, 1 }
 0x2d9   :  { %v2352_v23 = vadd.f32 %v2351_v29, %v2331_v22 }
 0x2da   :  { %v2276_v37 = vadd.f32 %v2275_v34, %v2274_v31 }
 0x2db   :  { %v2353_v1 = vadd.f32 %v2352_v23, %v2334_v21 }
 0x2dc   :  { %v2337_v25 = vpop.xlane.xlu0 %2336  ;;  %v2362_v40 = vmul.f32 0.25, %v2276_v37 }
 0x2dd   :  { %v2354_v0 = vadd.f32 %v2353_v1, %v2337_v25 }
 0x2df   :  { %v2355_v28 = vadd.f32 %v2354_v0, %v2340_v26 }
 0x2e1   :  { %v2356_v30 = vrot.slane %v2355_v28, 4 }
 0x2e3   :  { %v2357_v32 = vadd.f32 %v2356_v30, %v2355_v28 }
 0x2e5   :  { %v2358_v33 = vrot.slane %v2357_v32, 2 }
 0x2e7   :  { %v2359_v35 = vadd.f32 %v2358_v33, %v2357_v32 }
 0x2e9   :  { %v2360_v36 = vrot.slane %v2359_v35, 1 }
 0x2eb   :  { %v2361_v38 = vadd.f32 %v2360_v36, %v2359_v35 }
 0x2ed   :  { %v2363_v39 = vmul.f32 0.0625, %v2361_v38 }
 0x2ef   :  { %v2364_v41 = vadd.f32 %v2363_v39, %v2362_v40 }
 0x2f1   :  { %2366 = vst.msk [vmem:[#allocation9] sm:$0x1] %vm2365_vm7, %v2364_v41 }
 0x2f2   :  { %2469 = shalt.err (!%p2466_p6)
}
 0x2f3   :  { %s2470_s28 = scalar_lea.hbm %s2762_s4, 16 }
 0x2f4   :  { %p2471_p7 = scmp.ne.s32.totalorder %s2762_s4, %s2470_s28  ;;  %p2474_p8 = scmp.lt.u32.totalorder %s2470_s28, %s2762_s4 }
 0x2f6   :  { %p2476_p9 = pnand %p2474_p8, %p2471_p7 }
 0x2f8   :  { %2479 = shalt.err (!%p2476_p9)
}
 0x2f9   :  { %2376 = dma.vmem_to_hbm [thread:$0]  %s2374_s23, 16, %s2762_s4, [#allocation6]  }
 0x2fa   :  { %2484 = dma.done.wait [#allocation6], 16  }
 0x2fb   :  { %2485 = vsyncadd [#allocation6], 4294967280 }
 0x2fc   :  { %2380 = vsyncpa [#allocation5], 1 }
 0x2fd   :  { %2381 = vsyncpa [#allocation8], 1 }
 0x2fe   :  { %2382 = vsyncpa [#allocation6], 1 }

</bundles_post_ra>
